<compile_context>
chip_gen: v7x
topology: tpu7x:2x2x1
jax: 0.10.0
libtpu: 0.0.40
codegen_flags: <defaults>
</compile_context>

<pallas_src>
import jax
import jax.numpy as jnp
from jax.experimental import pallas as pl
from jax.experimental.pallas import tpu as pltpu

N, C, H, W = 2, 1280, 7, 7     # MobileNetV2 feature map for a 224x224 input
HW = H * W                      # 49: depthwise 7x7 with pad=0 collapses spatial
HWP = 56                        # HW padded to a multiple of 8 (dense sublane tiles)
OUT = 512
EPS = 1e-5

TC = 640                        # K (channel) tile: 2 reduction steps over C=1280
TO = 256                        # OUT tile: 2 parallel tiles (v7x megacore split)


# ----------------------------------------------------------------------------
# Kernel (per grid step (j, k)):
#   y_k   = sum_hw x[:, :, kC] * wdw[:, :, kC]          (VPU, f32 accumulate)
#   acc  += y_k(bf16) @ wfc[kC, jOUT]                   (MXU, f32 accumulate)
#   on last k: o[:, jOUT] = acc + bias[jOUT]
# ----------------------------------------------------------------------------
def match_head_kernel(x_ref, wdw_ref, wfc_ref, bias_ref, o_ref, acc_ref):
    k = pl.program_id(1)

    @pl.when(k == 0)
    def _init():
        acc_ref[...] = jnp.zeros_like(acc_ref)

    # Depthwise 7x7 (pad=0 on a 7x7 map) == per-channel weighted spatial sum.
    # Inputs live in HBM as bf16; upcast here and keep the accumulation in f32.
    wdw = wdw_ref[0].astype(jnp.float32)                                # (HWP, TC)
    nb = x_ref.shape[0]
    parts = [
        jnp.sum(x_ref[i].astype(jnp.float32) * wdw, axis=0, keepdims=True)
        for i in range(nb)                                              # tiny static unroll over batch
    ]
    y = parts[0] if nb == 1 else jnp.concatenate(parts, axis=0)         # (N, TC) f32

    # MXU matmul: bf16 x bf16 -> f32 accumulate into the resident scratch.
    acc_ref[...] += jnp.dot(y.astype(jnp.bfloat16), wfc_ref[...],
                            preferred_element_type=jnp.float32)

    @pl.when(k == pl.num_programs(1) - 1)
    def _finalize():
        o_ref[...] = acc_ref[...] + bias_ref[...]                       # folded bias / BN shifts


# ----------------------------------------------------------------------------
# One-time parameter preparation (NOT in the per-call path).
# ----------------------------------------------------------------------------
def fold_params(params):
    sc2 = params["bn2_gamma"] / jnp.sqrt(params["bn2_var"] + EPS)
    sh2 = params["bn2_beta"] - params["bn2_mean"] * sc2
    sc1 = params["bn1_gamma"] / jnp.sqrt(params["bn1_var"] + EPS)
    sh1 = params["bn1_beta"] - params["bn1_mean"] * sc1

    wfc = params["fc_weight"].T                                         # (C, OUT) f32
    wdw = params["dw_weight"].reshape(C, HW).T                          # (HW, C)  f32

    wdw_f = wdw * sc2[None, :]                                          # BN2d scale folded in
    wdw_f = jnp.pad(wdw_f, ((0, HWP - HW), (0, 0)))                     # pad HW 49 -> 56 (zero taps)
    wdw_f = wdw_f.reshape(1, HWP, C).astype(jnp.bfloat16)               # bf16 HBM storage

    wfc_f = (wfc * sc1[None, :]).astype(jnp.bfloat16)                   # BN1d scale folded, bf16 storage
    bias_f = ((sh2 @ wfc + params["fc_bias"]) * sc1 + sh1).reshape(1, OUT).astype(jnp.float32)

    return {
        "wdw": jax.device_put(wdw_f),
        "wfc": jax.device_put(wfc_f),
        "bias": jax.device_put(bias_f),
    }


def features_to_lane_layout(feat_nchw):
    # One-time relayout: (N, C, H, W) -> (N, HWP, C), C=1280 on the 128-lane axis,
    # HW zero-padded to 56 sublanes, bf16 HBM storage.
    # TODO(synk): in a real pipeline the backbone should emit NHWC (+bf16) directly
    # so this transpose/pad/cast is never paid per call.
    n = feat_nchw.shape[0]
    x = jnp.transpose(feat_nchw, (0, 2, 3, 1)).reshape(n, HW, C)
    x = jnp.pad(x, ((0, 0), (0, HWP - HW), (0, 0)))
    return x.astype(jnp.bfloat16)


# ----------------------------------------------------------------------------
# Per-call wrapper: grid = (OUT tiles, K tiles) = (2, 2).
#   - leading axis "parallel": v7x megacore shards the OUT/weight halves.
#   - trailing axis "arbitrary": C reduction, double-buffered wfc/x DMAs under
#     compute; output + bias index maps pinned across it (accumulator pattern).
# Per-step VMEM footprint ~1 MB (double-buffered) -- well under every scoped
# VMEM default. If the batch is ever scaled up, add an M-tiled parallel axis.
# ----------------------------------------------------------------------------
@jax.jit
def match_mobile_head(x_lane, wdw, wfc, bias):
    n = x_lane.shape[0]
    return pl.pallas_call(
        match_head_kernel,
        out_shape=jax.ShapeDtypeStruct((n, OUT), jnp.float32),
        grid_spec=pltpu.PrefetchScalarGridSpec(
            num_scalar_prefetch=0,
            grid=(OUT // TO, C // TC),
            in_specs=[
                pl.BlockSpec((n, HWP, TC), lambda j, k: (0, 0, k)),   # x tile over C
                pl.BlockSpec((1, HWP, TC), lambda j, k: (0, 0, k)),   # wdw tile over C
                pl.BlockSpec((TC, TO),     lambda j, k: (k, j)),      # fc weight tile
                pl.BlockSpec((1, TO),      lambda j, k: (0, j)),      # bias pinned across k
            ],
            out_specs=pl.BlockSpec((n, TO), lambda j, k: (0, j)),     # pinned across k (accum)
            scratch_shapes=[pltpu.VMEM((n, TO), jnp.float32)],
        ),
        compiler_params=pltpu.CompilerParams(
            dimension_semantics=("parallel", "arbitrary")),
    )(x_lane, wdw, wfc, bias)


# ----------------------------------------------------------------------------
# Param init + pure-JAX f32 reference of the same head (for correctness check).
# ----------------------------------------------------------------------------
def _init_params(key):
    ks = jax.random.split(key, 11)
    return {
        # GDConv depthwise weight: PyTorch shape (C, 1, 7, 7), groups=C, bias=False
        "dw_weight": 0.05 * jax.random.normal(ks[0], (C, 1, H, W), jnp.float32),
        # BatchNorm2d(1280)
        "bn2_gamma": 1.0 + 0.1 * jax.random.normal(ks[1], (C,), jnp.float32),
        "bn2_beta": 0.1 * jax.random.normal(ks[2], (C,), jnp.float32),
        "bn2_mean": 0.1 * jax.random.normal(ks[3], (C,), jnp.float32),
        "bn2_var": jnp.abs(1.0 + 0.1 * jax.random.normal(ks[4], (C,), jnp.float32)),
        # Linear(1280, 512): PyTorch weight shape (512, 1280)
        "fc_weight": 0.02 * jax.random.normal(ks[5], (OUT, C), jnp.float32),
        "fc_bias": 0.02 * jax.random.normal(ks[6], (OUT,), jnp.float32),
        # BatchNorm1d(512)
        "bn1_gamma": 1.0 + 0.1 * jax.random.normal(ks[7], (OUT,), jnp.float32),
        "bn1_beta": 0.1 * jax.random.normal(ks[8], (OUT,), jnp.float32),
        "bn1_mean": 0.1 * jax.random.normal(ks[9], (OUT,), jnp.float32),
        "bn1_var": jnp.abs(1.0 + 0.1 * jax.random.normal(ks[10], (OUT,), jnp.float32)),
    }


def _reference(feat_nchw, p):
    x = jnp.transpose(feat_nchw, (0, 2, 3, 1)).reshape(feat_nchw.shape[0], HW, C)
    wdw = p["dw_weight"].reshape(C, HW).T                                  # (HW, C)
    y = jnp.sum(x * wdw[None], axis=1)                                     # (N, C)
    sc2 = p["bn2_gamma"] / jnp.sqrt(p["bn2_var"] + EPS)
    y = (y - p["bn2_mean"]) * sc2 + p["bn2_beta"]
    z = y @ p["fc_weight"].T + p["fc_bias"]
    sc1 = p["bn1_gamma"] / jnp.sqrt(p["bn1_var"] + EPS)
    return (z - p["bn1_mean"]) * sc1 + p["bn1_beta"]


if __name__ == "__main__":
    key = jax.random.PRNGKey(0)
    k_feat, k_par = jax.random.split(key)

    # Feature map the MobileNetV2 backbone would emit for a 224x224 image batch.
    feat = jax.random.normal(k_feat, (N, C, H, W), jnp.float32)
    params = _init_params(k_par)

    # One-time prep (outside the per-call path): folded/padded/bf16 params + layout.
    folded = fold_params(params)
    x_lane = jax.block_until_ready(features_to_lane_layout(feat))

    out = match_mobile_head(x_lane, folded["wdw"], folded["wfc"], folded["bias"])
    out = jax.block_until_ready(out)

    ref = _reference(feat, params)
    assert out.shape == (N, OUT)
    # Tolerance sized for the intentional bf16 HBM storage of x / wdw / wfc
    # (all accumulations stay f32; the BN/bias folding itself is exact in f32).
    err = jnp.max(jnp.abs(out - ref))
    assert jnp.allclose(out, ref, atol=2.5e-2, rtol=1e-2), f"max abs err = {err}"
    print("KERNEL_OK")
</pallas_src>

<mosaic_0001>
module attributes {stable_mosaic.version = 11 : i64} {
  func.func @match_head_kernel(%arg0: i32, %arg1: i32, %arg2: memref<2x56x640xbf16, #tpu.memory_space<vmem>>, %arg3: memref<1x56x640xbf16, #tpu.memory_space<vmem>>, %arg4: memref<640x256xbf16, #tpu.memory_space<vmem>>, %arg5: memref<1x256xf32, #tpu.memory_space<vmem>>, %arg6: memref<2x256xf32, #tpu.memory_space<vmem>>, %arg7: memref<2x256xf32, #tpu.memory_space<vmem>>) attributes {dimension_semantics = [#tpu.dimension_semantics<parallel>, #tpu.dimension_semantics<arbitrary>], iteration_bounds = array<i64: 2, 2>, scalar_prefetch = 0 : i64, scratch_operands = 1 : i64, tpu.core_type = #tpu.core_type<tc>, window_params = [{transform_indices = @transform_0, window_bounds = array<i64: 2, 56, 640>}, {transform_indices = @transform_1, window_bounds = array<i64: 1, 56, 640>}, {transform_indices = @transform_2, window_bounds = array<i64: 640, 256>}, {transform_indices = @transform_3, window_bounds = array<i64: 1, 256>}, {transform_indices = @transform_4, window_bounds = array<i64: 2, 256>}]} {
    %c0_i32 = arith.constant 0 : i32
    %0 = arith.cmpi eq, %arg1, %c0_i32 : i32
    %1 = arith.extui %0 : i1 to i32
    %c0_i32_0 = arith.constant 0 : i32
    %2 = arith.cmpi ne, %1, %c0_i32_0 : i32
    scf.if %2 {
      %cst_17 = arith.constant 0.000000e+00 : f32
      %28 = vector.broadcast %cst_17 : f32 to vector<2x256xf32>
      %c0_18 = arith.constant 0 : index
      %c0_19 = arith.constant 0 : index
      %29 = vector.load %arg7[%c0_18, %c0_19] : memref<2x256xf32, #tpu.memory_space<vmem>>, vector<2x256xf32>
      tpu.vector_store %arg7[%c0_18, %c0_19], %28 {strides = array<i32>} : memref<2x256xf32, #tpu.memory_space<vmem>>, vector<2x256xf32>,
    } else {
    }
    %c0 = arith.constant 0 : index
    %c0_1 = arith.constant 0 : index
    %c0_2 = arith.constant 0 : index
    %3 = vector.load %arg3[%c0, %c0_1, %c0_2] : memref<1x56x640xbf16, #tpu.memory_space<vmem>>, vector<1x56x640xbf16>
    %4 = vector.shape_cast %3 : vector<1x56x640xbf16> to vector<56x640xbf16>
    %5 = arith.extf %4 : vector<56x640xbf16> to vector<56x640xf32>
    %c0_3 = arith.constant 0 : index
    %c0_4 = arith.constant 0 : index
    %c0_5 = arith.constant 0 : index
    %6 = vector.load %arg2[%c0_3, %c0_4, %c0_5] : memref<2x56x640xbf16, #tpu.memory_space<vmem>>, vector<1x56x640xbf16>
    %7 = vector.shape_cast %6 : vector<1x56x640xbf16> to vector<56x640xbf16>
    %8 = arith.extf %7 : vector<56x640xbf16> to vector<56x640xf32>
    %9 = arith.mulf %8, %5 : vector<56x640xf32>
    %cst = arith.constant dense<0.000000e+00> : vector<640xf32>
    %10 = vector.multi_reduction <add>, %9, %cst [0] : vector<56x640xf32> to vector<640xf32>
    %11 = vector.shape_cast %10 : vector<640xf32> to vector<1x640xf32>
    %c1 = arith.constant 1 : index
    %c0_6 = arith.constant 0 : index
    %c0_7 = arith.constant 0 : index
    %12 = vector.load %arg2[%c1, %c0_6, %c0_7] : memref<2x56x640xbf16, #tpu.memory_space<vmem>>, vector<1x56x640xbf16>
    %13 = vector.shape_cast %12 : vector<1x56x640xbf16> to vector<56x640xbf16>
    %14 = arith.extf %13 : vector<56x640xbf16> to vector<56x640xf32>
    %15 = arith.mulf %14, %5 : vector<56x640xf32>
    %cst_8 = arith.constant dense<0.000000e+00> : vector<640xf32>
    %16 = vector.multi_reduction <add>, %15, %cst_8 [0] : vector<56x640xf32> to vector<640xf32>
    %17 = vector.shape_cast %16 : vector<640xf32> to vector<1x640xf32>
    %18 = tpu.concatenate %11, %17 in 0 : vector<1x640xf32>, vector<1x640xf32> -> vector<2x640xf32>
    %c0_9 = arith.constant 0 : index
    %c0_10 = arith.constant 0 : index
    %19 = vector.load %arg7[%c0_9, %c0_10] : memref<2x256xf32, #tpu.memory_space<vmem>>, vector<2x256xf32>
    %20 = arith.truncf %18 : vector<2x640xf32> to vector<2x640xbf16>
    %c0_11 = arith.constant 0 : index
    %c0_12 = arith.constant 0 : index
    %21 = vector.load %arg4[%c0_11, %c0_12] : memref<640x256xbf16, #tpu.memory_space<vmem>>, vector<640x256xbf16>
    %cst_13 = arith.constant dense<0.000000e+00> : vector<2x256xf32>
    %22 = tpu.matmul %20, %21, %cst_13 {dimension_numbers = #tpu.dot_dimension_numbers<[1], [0], [0], [1], [0, 0, 1, 1], [], []>} : vector<2x640xbf16>, vector<640x256xbf16>, vector<2x256xf32> -> vector<2x256xf32>
    %23 = arith.addf %19, %22 : vector<2x256xf32>
    %c0_14 = arith.constant 0 : index
    %c0_15 = arith.constant 0 : index
    %24 = vector.load %arg7[%c0_14, %c0_15] : memref<2x256xf32, #tpu.memory_space<vmem>>, vector<2x256xf32>
    tpu.vector_store %arg7[%c0_14, %c0_15], %23 {strides = array<i32>} : memref<2x256xf32, #tpu.memory_space<vmem>>, vector<2x256xf32>,
    %c1_i32 = arith.constant 1 : i32
    %25 = arith.cmpi eq, %arg1, %c1_i32 : i32
    %26 = arith.extui %25 : i1 to i32
    %c0_i32_16 = arith.constant 0 : i32
    %27 = arith.cmpi ne, %26, %c0_i32_16 : i32
    scf.if %27 {
      %c0_17 = arith.constant 0 : index
      %c0_18 = arith.constant 0 : index
      %28 = vector.load %arg7[%c0_17, %c0_18] : memref<2x256xf32, #tpu.memory_space<vmem>>, vector<2x256xf32>
      %c0_19 = arith.constant 0 : index
      %c0_20 = arith.constant 0 : index
      %29 = vector.load %arg5[%c0_19, %c0_20] : memref<1x256xf32, #tpu.memory_space<vmem>>, vector<1x256xf32>
      %30 = vector.broadcast %29 : vector<1x256xf32> to vector<2x256xf32>
      %31 = arith.addf %28, %30 : vector<2x256xf32>
      %c0_21 = arith.constant 0 : index
      %c0_22 = arith.constant 0 : index
      %32 = vector.load %arg6[%c0_21, %c0_22] : memref<2x256xf32, #tpu.memory_space<vmem>>, vector<2x256xf32>
      tpu.vector_store %arg6[%c0_21, %c0_22], %31 {strides = array<i32>} : memref<2x256xf32, #tpu.memory_space<vmem>>, vector<2x256xf32>,
    } else {
    }
    return
  }
  func.func @transform_0(%arg0: i32, %arg1: i32) -> (i32, i32, i32) {
    %c0_i32 = arith.constant 0 : i32
    %c0_i32_0 = arith.constant 0 : i32
    %c0_i32_1 = arith.constant 0 : i32
    return %c0_i32, %c0_i32_0, %arg1 : i32, i32, i32
  }
  func.func @transform_1(%arg0: i32, %arg1: i32) -> (i32, i32, i32) {
    %c0_i32 = arith.constant 0 : i32
    %c0_i32_0 = arith.constant 0 : i32
    %c0_i32_1 = arith.constant 0 : i32
    return %c0_i32, %c0_i32_0, %arg1 : i32, i32, i32
  }
  func.func @transform_2(%arg0: i32, %arg1: i32) -> (i32, i32) {
    %c0_i32 = arith.constant 0 : i32
    return %arg1, %arg0 : i32, i32
  }
  func.func @transform_3(%arg0: i32, %arg1: i32) -> (i32, i32) {
    %c0_i32 = arith.constant 0 : i32
    %c0_i32_0 = arith.constant 0 : i32
    return %c0_i32, %arg0 : i32, i32
  }
  func.func @transform_4(%arg0: i32, %arg1: i32) -> (i32, i32) {
    %c0_i32 = arith.constant 0 : i32
    %c0_i32_0 = arith.constant 0 : i32
    return %c0_i32, %arg0 : i32, i32
  }
}

</mosaic_0001>

<bundles_post_ra>
// kernel: match_mobile_head.1
= control target key start
LH: loop header
LB: loop body
LE: loop exit
PB: predicated region body
PF: predicated region fallthrough
CT: control target
= control target key end

     0   :  { %s3059_s0 = inlined_call_operand.hbm [shape: bf16[2,56,1280], index: 0, kind: input, shape index: {}]   ;;  %s3060_s1 = inlined_call_operand.hbm [shape: bf16[1,56,1280], index: 1, kind: input, shape index: {}]   ;;  %s3061_s2 = inlined_call_operand.hbm [shape: bf16[1280,512], index: 2, kind: input, shape index: {}]   ;;  %s3062_s3 = inlined_call_operand.hbm [shape: f32[1,512], index: 3, kind: input, shape index: {}]   ;;  %s3063_s4 = inlined_call_operand.hbm [shape: f32[2,512], index: 4, kind: output, shape index: {}]  }
   0x1   :  { %3075 = sst [smem:[#allocation23_spill]] %s3059_s0 }
   0x2   :  { %3076 = sst [smem:[#allocation24_spill]] %s3060_s1 }
   0x3   :  { %3077 = sst [smem:[#allocation25_spill]] %s3061_s2 }
   0x4   :  { %3078 = sst [smem:[#allocation26_spill]] %s3062_s3 }
   0x5   :  { %3079 = sst [smem:[#allocation27_spill]] %s3063_s4 }
   0x6   :  { %9 = vsyncpa [#allocation4], 0 }
   0x7   :  { %11 = vsyncpa [#allocation4 + $0x1], 0 }
   0x8   :  { %12 = vsyncpa [#allocation7], 0 }
   0x9   :  { %14 = vsyncpa [#allocation7 + $0x1], 0 }
   0xa   :  { %15 = vsyncpa [#allocation10], 0 }
   0xb   :  { %17 = vsyncpa [#allocation10 + $0x1], 0 }
   0xc   :  { %18 = vsyncpa [#allocation5], 0 }
   0xd   :  { %20 = vsyncpa [#allocation5 + $0x1], 0  ;;  %s2360_s15 = smov 0   ;;  %s2362_s16 = smov 0  }
   0xe   :  { %s2364_s17 = smov 0   ;;  %s2366_s18 = smov 0  }
   0xf   :  { %s2368_s19 = smov 0   ;;  %s2370_s20 = smov 0  }
  0x10   :  { %s2372_s21 = smov 0   ;;  %s2374_s22 = smov 0  }
  0x11   :  { %s2376_s23 = smov 0   ;;  %s2378_s24 = smov 0  }
  0x12   :  { %s2380_s25 = smov 0   ;;  %s2382_s26 = smov 0  }
  0x13   :  { %s2384_s27 = smov 0   ;;  %s2386_s28 = smov 0  }
  0x14 LB: > { %3080 = sst [smem:[#allocation17_spill]] %s2266_s15  ;;  %s35_s29 = sadd.s32 1, %s2310_s26  ;;  %s2318_s28 = sphi %s2386_s28, %s26_s28   ;;  %s2314_s27 = sphi %s2384_s27, %s3136_s27   ;;  %s2310_s26 = sphi %s2382_s26, %s3135_s26   ;;  %s2306_s25 = sphi %s2380_s25, %s3134_s25   ;;  %s2302_s24 = sphi %s2378_s24, %s3133_s24   ;;  %s2298_s23 = sphi %s2376_s23, %s3132_s23   ;;  %s2294_s22 = sphi %s2374_s22, %s3131_s22   ;;  %s2290_s21 = sphi %s2372_s21, %s3130_s21   ;;  %s2286_s20 = sphi %s2370_s20, %s3129_s20   ;;  %s2282_s19 = sphi %s2368_s19, %s3128_s19   ;;  %s2278_s18 = sphi %s2366_s18, %s3127_s18   ;;  %s2274_s17 = sphi %s2364_s17, %s3126_s17   ;;  %s2270_s16 = sphi %s2362_s16, %s3125_s16   ;;  %s2266_s15 = sphi %s2360_s15, %s3123_s15  }
  0x15   : > { %3081 = sst [smem:[#allocation18_spill]] %s2270_s16  ;;  %p2432_p0 = scmp.ge.s32.totalorder %s35_s29, 2 }
  0x16   : > { %3082 = sst [smem:[#allocation19_spill]] %s2302_s24  ;;  %p52_p1 = scmp.ne.s32.totalorder %s2298_s23, %s2294_s22 }
  0x17   : > { %3083 = sst [smem:[#allocation20_spill]] %s2306_s25  ;;  %p3067_p2 = scmp.eq.s32.totalorder %s2318_s28, 0 }
  0x18   : > { %s3138_s29 = smov (%p2432_p0, %s35_s29), 0  ;;  %p3066_p4 = scmp.lt.s32.totalorder %s2318_s28, 4 }
  0x19   : > { %p54_p3 = por %p3067_p2, %p52_p1  ;;  %s2447_s6 = sand.u32 1, %s2298_s23  }
  0x1a   : > { %s2450_s7 = smul.u32 320, %s2310_s26  ;;  %s209_s9 = sand.u32 1, %s2318_s28  }
  0x1b   : > { %p2454_p5 = pnand %p3066_p4, %p54_p3  ;;  %s1673_s10 = smul.u32 140, %s2447_s6 }
  0x1c   : > { %s3086_s1 = sld [smem:[#allocation24_spill]]  ;;  %p1550_p6 = scmp.ge.s32.totalorder %s2318_s28, 1 }
  0x1d   : > { %p271_p7 = scmp.lt.s32.totalorder %s2318_s28, 5  ;;  %s213_s14 = scalar_lea.vmem [#allocation6], %s1673_s10 }
  0x1e   : > { %s220_s30 = sshll.u32 %s213_s14, 4  ;;  %s2474_s25 = scalar_lea.sflag [#allocation7], %s209_s9  ;;  %s2468_s30 = int_to_ptr.vmem [resolvable:$true] %s220_s30 }
  0x1f   : > { %p2470_p8 = pnand %p1550_p6, %p271_p7  ;;  %p1950_p10 = pneg %p2454_p5 }
  0x21   : > { %s3087_s4 = scalar_select %p2470_p8, 1, 0 }
  0x22   : > { %s2464_s13 = scalar_lea.hbm %s3086_s1, %s2450_s7  ;;  %s1953_s10 = scalar_lea.hbm %s3086_s1, 4480 }
  0x23   : > { %3088 = sst [smem:[#allocation21_spill]] %s3087_s4  ;;  %s1948_s24 = scalar_lea.hbm %s2464_s13, 2240 }
  0x24   : > { %p1949_p9 = scmp.ne.s32.totalorder %s2464_s13, %s1948_s24  ;;  %p1954_p13 = scmp.lt.u32.totalorder %s2464_s13, %s3086_s1 }
  0x25   : > { %p1955_p1 = scmp.lt.u32.totalorder %s1953_s10, %s1948_s24  ;;  %p1957_p6 = scmp.lt.u32.totalorder %s1948_s24, %s2464_s13 }
  0x26   : > { %p1951_p11 = pnand %p1950_p10, %p1949_p9 }
  0x27   : > { %p1956_p3 = por %p1955_p1, %p1954_p13 }
  0x28   : > { %p1952_p12 = pneg %p1951_p11 }
  0x29   : > { %p1958_p7 = por %p1957_p6, %p1956_p3 }
  0x2b   : > { %p1959_p4 = pnand %p1958_p7, %p1952_p12 }
  0x2d   : > { %1962 = shalt.err (!%p1959_p4)
}
  0x2e   : > { %s1963_s9 = scalar_lea.vmem %s2468_s30, 2240  ;;  %s2320_s11 = smov [#allocation6]  }
  0x2f   : > { %p1964_p9 = scmp.ne.s32.totalorder %s2468_s30, %s1963_s9  ;;  %s1968_s12 = sshll.u32 %s2320_s11, 4  ;;  %s1969_s12 = int_to_ptr.vmem [resolvable:$false] %s1968_s12 }
  0x30   : > { %s1970_s3 = scalar_lea.vmem %s1969_s12, 4480  ;;  %p1971_p8 = scmp.lt.s32.totalorder %s2468_s30, %s1969_s12 }
  0x31   : > { %p1966_p11 = pnand %p1964_p9, %p1950_p10  ;;  %p1972_p13 = scmp.lt.s32.totalorder %s1970_s3, %s1963_s9 }
  0x33   : > { %p1967_p2 = pneg %p1966_p11  ;;  %p1973_p1 = por %p1972_p13, %p1971_p8 }
  0x35   : > { %p1974_p3 = pnand %p1973_p1, %p1967_p2 }
  0x37   : > { %1977 = shalt.err (!%p1974_p3)
}
  0x38   : > { %s3070_s24 = smov 640   ;;  %s2322_s10 = smov 320  }
  0x39   : > { %s2323_s14 = smov 20   ;;  %s1672_s9 = smul.u32 280, %s2447_s6 }
  0x3a   : > { %1694 = dma.hbm_to_vmem [thread:$0]  (!%p2454_p5), %s2464_s13, 2240, %s2468_s30, %s2474_s25, %s3070_s24, %s2322_s10, %s2323_s14  }
  0x3b   : > { %s3089_s0 = sld [smem:[#allocation23_spill]]  ;;  %s192_s1 = scalar_lea.vmem [#allocation3], %s1672_s9 }
  0x3c   : > { %s199_s4 = sshll.u32 %s192_s1, 4  ;;  %s189_s15 = scalar_lea.sflag [#allocation4], %s2447_s6  ;;  %s2512_s4 = int_to_ptr.vmem [resolvable:$true] %s199_s4 }
  0x41   : > { %s2510_s3 = scalar_lea.hbm %s3089_s0, %s2450_s7  ;;  %s1983_s11 = scalar_lea.hbm %s3089_s0, 8960 }
  0x42   : > { %s1978_s16 = scalar_lea.hbm %s2510_s3, 4480  ;;  %p1984_p12 = scmp.lt.u32.totalorder %s2510_s3, %s3089_s0 }
  0x43   : > { %p1979_p2 = scmp.ne.s32.totalorder %s2510_s3, %s1978_s16  ;;  %p1985_p6 = scmp.lt.u32.totalorder %s1983_s11, %s1978_s16 }
  0x44   : > { %p1987_p9 = scmp.lt.u32.totalorder %s1978_s16, %s2510_s3 }
  0x45   : > { %p1981_p4 = pnand %p1979_p2, %p1950_p10  ;;  %p1986_p7 = por %p1985_p6, %p1984_p12 }
  0x47   : > { %p1982_p8 = pneg %p1981_p4  ;;  %p1988_p11 = por %p1987_p9, %p1986_p7 }
  0x49   : > { %p1989_p13 = pnand %p1988_p11, %p1982_p8 }
  0x4b   : > { %1992 = shalt.err (!%p1989_p13)
}
  0x4c   : > { %s1993_s1 = scalar_lea.vmem %s2512_s4, 4480  ;;  %s2324_s9 = smov [#allocation3]  }
  0x4d   : > { %p1994_p1 = scmp.ne.s32.totalorder %s2512_s4, %s1993_s1  ;;  %s1998_s30 = sshll.u32 %s2324_s9, 4  ;;  %s1999_s30 = int_to_ptr.vmem [resolvable:$false] %s1998_s30 }
  0x4e   : > { %s2000_s24 = scalar_lea.vmem %s1999_s30, 8960  ;;  %p2001_p4 = scmp.lt.s32.totalorder %s2512_s4, %s1999_s30 }
  0x4f   : > { %p1996_p3 = pnand %p1994_p1, %p1950_p10  ;;  %p2002_p12 = scmp.lt.s32.totalorder %s2000_s24, %s1993_s1 }
  0x51   : > { %p1997_p2 = pneg %p1996_p3  ;;  %p2003_p6 = por %p2002_p12, %p2001_p4 }
  0x53   : > { %p2004_p7 = pnand %p2003_p6, %p1997_p2 }
  0x55   : > { %2007 = shalt.err (!%p2004_p7)
}
  0x56   : > { %s3090_s16 = smov 640   ;;  %s99_s13 = sadd.s32 1, %s2286_s20 }
  0x57   : > { %1691 = dma.hbm_to_vmem [thread:$0]  (!%p2454_p5), %s2510_s3, 4480, %s2512_s4, %s189_s15, %s3090_s16, %s2322_s10, %s2323_s14  }
  0x58   : > { %p106_p10 = scmp.ne.s32.totalorder %s2286_s20, %s2282_s19  ;;  %s232_s11 = sand.u32 1, %s2286_s20  }
  0x59   : > { %s1674_s8 = smul.u32 640, %s232_s11  ;;  %s1544_s12 = sshll.u32 %s2314_s27, 1 }
  0x5a   : > { %p3091_p8 = scmp.eq.s32.totalorder %s2318_s28, 0  ;;  %s241_s1 = sadd.s32 %s2450_s7, %s1544_s12 }
  0x5b   : > { %s1546_s6 = sshll.u32 %s241_s1, 6  ;;  %s3092_s2 = sld [smem:[#allocation25_spill]] }
  0x5c   : > { %p108_p9 = por %p106_p10, %p3091_p8  ;;  %s234_s0 = scalar_lea.vmem [#allocation8], %s1674_s8 }
  0x5d   : > { %s244_s4 = sshll.u32 %s234_s0, 4  ;;  %p3093_p5 = scmp.lt.s32.totalorder %s2318_s28, 4  ;;  %s2556_s4 = int_to_ptr.vmem [resolvable:$true] %s244_s4 }
  0x5f   : > { %p2560_p11 = pnand %p3093_p5, %p108_p9 }
  0x61   : > { %s2554_s24 = scalar_lea.hbm %s3092_s2, %s1546_s6  ;;  %p2010_p1 = pneg %p2560_p11 }
  0x62   : > { %s2008_s7 = scalar_lea.hbm %s2554_s24, 10240  ;;  %s2013_s0 = scalar_lea.hbm %s3092_s2, 40960 }
  0x63   : > { %p2009_p13 = scmp.ne.s32.totalorder %s2554_s24, %s2008_s7  ;;  %p2014_p4 = scmp.lt.u32.totalorder %s2554_s24, %s3092_s2 }
  0x64   : > { %p2015_p12 = scmp.lt.u32.totalorder %s2013_s0, %s2008_s7  ;;  %p2017_p7 = scmp.lt.u32.totalorder %s2008_s7, %s2554_s24 }
  0x65   : > { %p2011_p3 = pnand %p2010_p1, %p2009_p13 }
  0x66   : > { %p2016_p6 = por %p2015_p12, %p2014_p4 }
  0x67   : > { %p2012_p2 = pneg %p2011_p3 }
  0x68   : > { %p2018_p10 = por %p2017_p7, %p2016_p6 }
  0x6a   : > { %p2019_p8 = pnand %p2018_p10, %p2012_p2 }
  0x6c   : > { %2022 = shalt.err (!%p2019_p8)
}
  0x6d   : > { %s2023_s11 = scalar_lea.vmem %s2556_s4, 10240  ;;  %s2325_s8 = smov [#allocation8]  }
  0x6e   : > { %p2024_p9 = scmp.ne.s32.totalorder %s2556_s4, %s2023_s11  ;;  %s2028_s12 = sshll.u32 %s2325_s8, 4  ;;  %s2029_s12 = int_to_ptr.vmem [resolvable:$false] %s2028_s12 }
  0x6f   : > { %s2030_s1 = scalar_lea.vmem %s2029_s12, 20480  ;;  %p2031_p3 = scmp.lt.s32.totalorder %s2556_s4, %s2029_s12 }
  0x70   : > { %p2026_p5 = pnand %p2024_p9, %p2010_p1  ;;  %p2032_p4 = scmp.lt.s32.totalorder %s2030_s1, %s2023_s11 }
  0x72   : > { %p2027_p13 = pneg %p2026_p5  ;;  %p2033_p12 = por %p2032_p4, %p2031_p3 }
  0x74   : > { %p2034_p6 = pnand %p2033_p12, %p2027_p13 }
  0x76   : > { %2037 = shalt.err (!%p2034_p6)
}
  0x77   : > { %s2326_s6 = smov 256   ;;  %s2327_s9 = smov 128  }
  0x78   : > { %s2328_s30 = smov 8   ;;  %s2591_s7 = sadd.s32 4294967295, %s2318_s28  }
  0x79   : > { %1697 = dma.hbm_to_vmem [thread:$0]  (!%p2560_p11), %s2554_s24, 10240, %s2556_s4, %s2474_s25, %s2326_s6, %s2327_s9, %s2328_s30  }
  0x7a   : > { %s1539_s10 = sadd.s32 4294967294, %s2318_s28   ;;  %s38_s14 = sadd.s32 1, %s2314_s27 }
  0x7b   : > { %s42_s0 = ssub.s32 %s2310_s26, %s3138_s29  ;;  %s3095_s3 = sld [smem:[#allocation18_spill]] }
  0x7c   : > { %s3140_s14 = smov (!%p2432_p0, %s38_s14), %s2314_s27  ;;  %s3096_s16 = sld [smem:[#allocation17_spill]] }
  0x7d   : > { %p43_p1 = scmp.eq.s32.totalorder %s42_s0, 0  ;;  %p58_p2 = scmp.ne.s32.totalorder %s2294_s22, %s2290_s21 }
  0x7e   : > { %p40_p11 = scmp.ge.s32.totalorder %s3140_s14, 2  ;;  %p59_p7 = scmp.eq.s32.totalorder %s2591_s7, 0 }
  0x7f   : > { %s3097_s25 = sadd.s32 1, %s2298_s23  ;;  %p112_p10 = scmp.ne.s32.totalorder %s2282_s19, %s2278_s18 }
  0x80   : > { %s2606_s24 = scalar_select %p43_p1, %s2298_s23, %s3097_s25  }
  0x81   : > { %s3142_s14 = smov (%p40_p11, %s3140_s14), 0  ;;  %p2612_p0 = por %p59_p7, %p58_p2 }
  0x82   : > { %3098 = sst [smem:[#allocation22_spill]] %s3142_s14  ;;  %s95_s21 = ssub.s32 %s2314_s27, %s3142_s14 }
  0x83   : > { %s125_s4 = sadd.s32 1, %s2274_s17  ;;  %s96_s15 = sor.u32 %s95_s21, %s42_s0 }
  0x84   : > { %p2623_p8 = por %p112_p10, %p59_p7  ;;  %p97_p9 = scmp.eq.s32.totalorder %s96_s15, 0 }
  0x85   : > { %p123_p5 = scmp.eq.s32.totalorder %s95_s21, 0  ;;  %p132_p13 = scmp.ne.s32.totalorder %s2274_s17, %s3095_s3 }
  0x86   : > { %s3100_s11 = scalar_select %p2623_p8, 1, 0 }
  0x87   : > { %p138_p3 = scmp.ne.s32.totalorder %s3095_s3, %s3096_s16  ;;  %p3101_p4 = scmp.eq.s32.totalorder %s2318_s28, 0 }
  0x88   : > { %s2634_s8 = scalar_select %p97_p9, %s2286_s20, %s99_s13  }
  0x89   : > { %s2637_s12 = scalar_select %p123_p5, %s2274_s17, %s125_s4  }
  0x8a   : > { %p134_p12 = por %p132_p13, %p3101_p4  ;;  %p2643_p6 = por %p138_p3, %p59_p7 }
  0x8b   : > { %p162_p1 = scmp.eq.s32.totalorder %s2591_s7, 3  ;;  %p168_p2 = scmp.eq.s32.totalorder %s1539_s10, 3 }
  0x8c   : > { %s3102_s18 = scalar_select %p2643_p6, 1, 0 }
  0x8d   : > { %s254_s1 = sand.u32 1, %s2274_s17   ;;  %s1664_s6 = sshll.u32 %s2314_s27, 5 }
  0x8e   : > { %p2650_p11 = por %p162_p1, %p132_p13  ;;  %p2654_p10 = por %p168_p2, %p138_p3 }
  0x8f   : > { %s1547_s30 = sshll.u32 %s254_s1, 1  ;;  %s3105_s16 = sld [smem:[#allocation26_spill]] }
  0x90   : > { %s3103_s9 = scalar_select %p2650_p11, 1, 0 }
  0x91   : > { %s3104_s13 = scalar_select %p2654_p10, 1, 0 }
  0x92   : > { %s258_s10 = scalar_lea.vmem [#allocation9], %s1547_s30  ;;  %p3107_p7 = scmp.lt.s32.totalorder %s2318_s28, 4 }
  0x93   : > { %s266_s21 = sshll.u32 %s258_s10, 4  ;;  %s255_s2 = scalar_lea.sflag [#allocation10], %s254_s1  ;;  %s2669_s21 = int_to_ptr.vmem [resolvable:$true] %s266_s21 }
  0x94   : > { %p2665_p9 = pnand %p3107_p7, %p134_p12 }
  0x95   : > { %s3106_s4 = smov %s3105_s16  ;;  %s2661_s25 = scalar_lea.hbm %s3105_s16, %s1664_s6 }
  0x96   : > { %s2038_s14 = scalar_lea.hbm %s2661_s25, 32  ;;  %p2040_p13 = pneg %p2665_p9 }
  0x97   : > { %p2039_p5 = scmp.ne.s32.totalorder %s2661_s25, %s2038_s14  ;;  %s2043_s0 = scalar_lea.hbm %s3106_s4, 64 }
  0x98   : > { %p2044_p12 = scmp.lt.u32.totalorder %s2661_s25, %s3106_s4  ;;  %p2045_p1 = scmp.lt.u32.totalorder %s2043_s0, %s2038_s14 }
  0x99   : > { %p2041_p3 = pnand %p2040_p13, %p2039_p5  ;;  %p2047_p7 = scmp.lt.u32.totalorder %s2038_s14, %s2661_s25 }
  0x9a   : > { %p2046_p2 = por %p2045_p1, %p2044_p12 }
  0x9b   : > { %p2042_p4 = pneg %p2041_p3 }
  0x9c   : > { %p2048_p10 = por %p2047_p7, %p2046_p2 }
  0x9e   : > { %p2049_p11 = pnand %p2048_p10, %p2042_p4 }
  0xa0   : > { %2052 = shalt.err (!%p2049_p11)
}
  0xa1   : > { %s2053_s1 = scalar_lea.vmem %s2669_s21, 32  ;;  %s2329_s10 = smov [#allocation9]  }
  0xa2   : > { %p2054_p5 = scmp.ne.s32.totalorder %s2669_s21, %s2053_s1  ;;  %s2058_s6 = sshll.u32 %s2329_s10, 4  ;;  %s2059_s6 = int_to_ptr.vmem [resolvable:$false] %s2058_s6 }
  0xa3   : > { %s2060_s30 = scalar_lea.vmem %s2059_s6, 64  ;;  %p2061_p8 = scmp.lt.s32.totalorder %s2669_s21, %s2059_s6 }
  0xa4   : > { %p2056_p3 = pnand %p2054_p5, %p2040_p13  ;;  %p2062_p12 = scmp.lt.s32.totalorder %s2060_s30, %s2053_s1 }
  0xa6   : > { %p2057_p6 = pneg %p2056_p3  ;;  %p2063_p1 = por %p2062_p12, %p2061_p8 }
  0xa8   : > { %p2064_p2 = pnand %p2063_p1, %p2057_p6 }
  0xaa   : > { %2067 = shalt.err (!%p2064_p2)
}
  0xab   : > { %1700 = dma.hbm_to_vmem [thread:$0]  (!%p2665_p9), %s2661_s25, 32, %s2669_s21, %s255_s2  }
  0xac   : > { %s3109_s14 = sld [smem:[#allocation21_spill]] }
  0xb2   : > { %p3110_p11 = scmp.ne.s32.totalorder %s3109_s14, 0 }
  0xb3   : > { %s277_s0 = sand.u32 (!%p3110_p11), 1, %s2294_s22  }
  0xb4   : > { %275 = sbr.rel (%p3110_p11) target bundleno = 584 (0x248), region = 36  ;;  %s278_s16 = scalar_lea.sflag (!%p3110_p11), [#allocation4], %s277_s0 }
  0xb5   : > { %s1675_s3 = smul.u32 (!%p3110_p11), 280, %s277_s0 }
  0xb7   : > { %s2699_s10 = scalar_lea.vmem (!%p3110_p11), [#allocation3], %s1675_s3 }
  0xbb   : > { %2153 = dma.done.wait (%p2612_p0), %s278_s16, 4480  }
  0xbc   : > { %2155 = vsyncadd (%p2612_p0), %s278_s16, 4294962816  ;;  %s286_s15 = sand.u32 1, %s2591_s7   ;;  %s1676_s1 = smul.u32 140, %s277_s0 }
  0xbd   : > { %s287_s2 = scalar_lea.sflag [#allocation7], %s286_s15 }
  0xbe   : > { %s2706_s25 = scalar_lea.vmem [#allocation6], %s1676_s1 }
  0xbf   : > { %2157 = dma.done.wait (%p2612_p0), %s287_s2, 2240  }
  0xc0   : > { %2159 = vsyncadd (%p2612_p0), %s287_s2, 4294965056  ;;  %s297_s21 = sand.u32 1, %s2282_s19   ;;  %p3111_p8 = scmp.ne.s32.totalorder %s3100_s11, 0 }
  0xc1   : > { %s1677_s6 = smul.u32 640, %s297_s21 }
  0xc3   : > { %s2713_s30 = scalar_lea.vmem [#allocation8], %s1677_s6 }
  0xc4   : > { %2161 = dma.done.wait (%p3111_p8), %s287_s2, 10240  }
  0xc5   : > { %2163 = vsyncadd (%p3111_p8), %s287_s2, 4294957056  ;;  %s3112_s7 = sld [smem:[#allocation18_spill]]  ;;  %p3113_p0 = scmp.ne.s32.totalorder %s3102_s18, 0 }
  0xcb   : > { %s2720_s14 = sand.u32 1, %s3112_s7  }
  0xcc   : > { %s1551_s0 = sshll.u32 %s2720_s14, 1  ;;  %s305_s5 = scalar_lea.sflag [#allocation10], %s2720_s14 }
  0xcd   : > { %s2724_s3 = scalar_lea.vmem [#allocation9], %s1551_s0 }
  0xce   : > { %2165 = dma.done.wait (%p3113_p0), %s305_s5, 32  }
  0xcf   : > { %2167 = vsyncadd (%p3113_p0), %s305_s5, 4294967264  ;;  %s1552_s16 = sshll.u32 %s2720_s14, 2  ;;  %s3114_s11 = sld [smem:[#allocation19_spill]] }
  0xd0   : > { %s2731_s15 = scalar_lea.vmem [#allocation11], %s1552_s16 }
  0xd5   : > { %p1553_p6 = scmp.ne.s32.totalorder %s3114_s11, 0 }
  0xd6   : > { %v2330_v0 = vmov (!%p1553_p6), 0.0  }
  0xd7   : > { %358 = sbr.rel (%p1553_p6) target bundleno = 222 (0xde), region = 56  ;;  %359 = vst [vmem:[#allocation2] sm:$0xf] (!%p1553_p6), %v2330_v0 }
  0xde PF: > { %v1828_v1 = vld [vmem:[%s2713_s30 + $0x104] ss:$8 sps:$4 sm:$0xff]   ;;  %v1830_v2 = vld [vmem:[%s2713_s30 + $0x100] ss:$8 sps:$4 sm:$0xff]   ;;  %v1831_v3 = vld [vmem:[%s2713_s30 + $0x114] ss:$8 sps:$4 sm:$0xff]  }
  0xdf   : > { %1252 = vmatprep.subr.bf16.mxu0 %v1828_v1  ;;  %v1833_v4 = vld [vmem:[%s2713_s30 + $0x110] ss:$8 sps:$4 sm:$0xff]   ;;  %v1834_v5 = vld [vmem:[%s2713_s30 + $0x124] ss:$8 sps:$4 sm:$0xff]   ;;  %v1836_v6 = vld [vmem:[%s2713_s30 + $0x120] ss:$8 sps:$4 sm:$0xff]  }
  0xe0   : > { %1253 = vmatpush1.bf16.msra.mxu0 %v1830_v2  ;;  %v1837_v7 = vld [vmem:[%s2713_s30 + $0x134] ss:$8 sps:$4 sm:$0xff]   ;;  %v1839_v8 = vld [vmem:[%s2713_s30 + $0x130] ss:$8 sps:$4 sm:$0xff]   ;;  %v1851_v9 = vld [vmem:[%s2713_s30 + $0x4] ss:$8 sps:$4 sm:$0xff]  }
  0xe1   : > { %1254 = vmatprep.subr.bf16.mxu0 %v1831_v3  ;;  %v1854_v10 = vld [vmem:[%s2713_s30] ss:$8 sps:$4 sm:$0xff]   ;;  %v1840_v11 = vld [vmem:[%s2713_s30 + $0x144] ss:$8 sps:$4 sm:$0xff]   ;;  %1211 = vmatprep.subr.bf16.mxu1 %v1851_v9  ;;  %v1857_v12 = vld [vmem:[%s2713_s30 + $0x14] ss:$8 sps:$4 sm:$0xff]  }
  0xe2   : > { %1212 = vmatpush1.bf16.msra.mxu1 %v1854_v10  ;;  %v1860_v13 = vld [vmem:[%s2713_s30 + $0x10] ss:$8 sps:$4 sm:$0xff]   ;;  %v1842_v14 = vld [vmem:[%s2713_s30 + $0x140] ss:$8 sps:$4 sm:$0xff]   ;;  %v1843_v15 = vld [vmem:[%s2713_s30 + $0x154] ss:$8 sps:$4 sm:$0xff]  }
  0xe3   : > { %1213 = vmatprep.subr.bf16.mxu1 %v1857_v12  ;;  %v1863_v16 = vld [vmem:[%s2713_s30 + $0x24] ss:$8 sps:$4 sm:$0xff]   ;;  %v1866_v17 = vld [vmem:[%s2713_s30 + $0x20] ss:$8 sps:$4 sm:$0xff]   ;;  %v1845_v18 = vld [vmem:[%s2713_s30 + $0x150] ss:$8 sps:$4 sm:$0xff]  }
  0xe4   : > { %1255 = vmatpush1.bf16.msra.mxu0 %v1833_v4  ;;  %v1869_v19 = vld [vmem:[%s2713_s30 + $0x34] ss:$8 sps:$4 sm:$0xff]   ;;  %v1846_v20 = vld [vmem:[%s2713_s30 + $0x164] ss:$8 sps:$4 sm:$0xff]   ;;  %v1848_v21 = vld [vmem:[%s2713_s30 + $0x160] ss:$8 sps:$4 sm:$0xff]  }
  0xe5   : > { %1256 = vmatprep.subr.bf16.mxu0 %v1834_v5  ;;  %v1872_v22 = vld [vmem:[%s2713_s30 + $0x30] ss:$8 sps:$4 sm:$0xff]   ;;  %v1875_v23 = vld [vmem:[%s2713_s30 + $0x44] ss:$8 sps:$4 sm:$0xff]   ;;  %v1849_v24 = vld [vmem:[%s2713_s30 + $0x174] ss:$8 sps:$4 sm:$0xff]  }
  0xe6   : > { %1214 = vmatpush1.bf16.msra.mxu1 %v1860_v13  ;;  %v1878_v25 = vld [vmem:[%s2713_s30 + $0x40] ss:$8 sps:$4 sm:$0xff]   ;;  %v1853_v26 = vld [vmem:[%s2713_s30 + $0x170] ss:$8 sps:$4 sm:$0xff]   ;;  %v1881_v27 = vld [vmem:[%s2713_s30 + $0x54] ss:$8 sps:$4 sm:$0xff]  }
  0xe7   : > { %1215 = vmatprep.subr.bf16.mxu1 %v1863_v16  ;;  %v1855_v28 = vld [vmem:[%s2713_s30 + $0x184] ss:$8 sps:$4 sm:$0xff]   ;;  %v1859_v29 = vld [vmem:[%s2713_s30 + $0x180] ss:$8 sps:$4 sm:$0xff]   ;;  %v1884_v30 = vld [vmem:[%s2713_s30 + $0x50] ss:$8 sps:$4 sm:$0xff]  }
  0xe8   : > { %1257 = vmatpush1.bf16.msra.mxu0 %v1836_v6  ;;  %v1887_v31 = vld [vmem:[%s2713_s30 + $0x64] ss:$8 sps:$4 sm:$0xff]   ;;  %v1861_v32 = vld [vmem:[%s2713_s30 + $0x194] ss:$8 sps:$4 sm:$0xff]   ;;  %v1865_v33 = vld [vmem:[%s2713_s30 + $0x190] ss:$8 sps:$4 sm:$0xff]  }
  0xe9   : > { %1258 = vmatprep.subr.bf16.mxu0 %v1837_v7  ;;  %v1890_v34 = vld [vmem:[%s2713_s30 + $0x60] ss:$8 sps:$4 sm:$0xff]   ;;  %v1867_v37 = vld [vmem:[%s2713_s30 + $0x1a4] ss:$8 sps:$4 sm:$0xff]   ;;  %v1893_v38 = vld [vmem:[%s2713_s30 + $0x74] ss:$8 sps:$4 sm:$0xff]  }
  0xea   : > { %1216 = vmatpush1.bf16.msra.mxu1 %v1866_v17  ;;  %v361_v35 = vld [vmem:[%s2706_s25 + $0x8] sm:$0xff]  ;;  %v364_v36 = vld [vmem:[%s2706_s25 + $0x1c] sm:$0xff]  ;;  %v367_v39 = vld [vmem:[%s2706_s25 + $0x30] sm:$0xff]  ;;  %v2185_v17 = vlaneseq  ;;  %vm719_vm0 = vcmask 1040384   ;;  %s3115_s18 = sld [smem:[#allocation19_spill]] }
  0xeb   : > { %1217 = vmatprep.subr.bf16.mxu1 %v1869_v19  ;;  %v2774_v40 = vld [vmem:[%s2706_s25 + $0x44] sm:$0xff]  ;;  %v2777_v41 = vld [vmem:[%s2706_s25 + $0x58] sm:$0xff]  ;;  %v2780_v42 = vld [vmem:[%s2706_s25 + $0x6c] sm:$0xff] }
  0xec   : > { %1259 = vmatpush1.bf16.msra.mxu0 %v1839_v8  ;;  %v417_v43 = vld [vmem:[%s2699_s10 + $0x8] sm:$0xff]  ;;  %v420_v44 = vld [vmem:[%s2699_s10 + $0x1c] sm:$0xff]  ;;  %v423_v45 = vld [vmem:[%s2699_s10 + $0x30] sm:$0xff] }
  0xed   : > { %1260 = vmatprep.subr.bf16.mxu0 %v1840_v11  ;;  %v426_v46 = vld [vmem:[%s2699_s10 + $0x44] sm:$0xff]  ;;  %v429_v49 = vld [vmem:[%s2699_s10 + $0x58] sm:$0xff]  ;;  %v432_v52 = vld [vmem:[%s2699_s10 + $0x6c] sm:$0xff]  ;;  %2172 = vmul.bf16.f32.vacc0 %v417_v43, %v361_v35 }
  0xee   : > { %1218 = vmatpush1.bf16.msra.mxu1 %v1872_v22  ;;  %v1871_v47 = vld [vmem:[%s2713_s30 + $0x1a0] ss:$8 sps:$4 sm:$0xff]   ;;  %v1873_v50 = vld [vmem:[%s2713_s30 + $0x1b4] ss:$8 sps:$4 sm:$0xff]   ;;  %v1896_v51 = vld [vmem:[%s2713_s30 + $0x70] ss:$8 sps:$4 sm:$0xff]   ;;  %2173 = vmac.bf16.f32.vacc0 %v420_v44, %v364_v36 }
  0xef   : > { %1219 = vmatprep.subr.bf16.mxu1 %v1875_v23  ;;  %v2788_v48 = vld [vmem:[%s2706_s25 + $0x80] sm:$0xff]  ;;  %v1561_v58 = vld [vmem:[%s2699_s10 + $0xbc] sm:$0xff]  ;;  %2174 = vmac.bf16.f32.vacc0 %v423_v45, %v367_v39 }
  0xf0   : > { %1261 = vmatpush1.bf16.msra.mxu0 %v1842_v14  ;;  %v1899_v53 = vld [vmem:[%s2713_s30 + $0x84] ss:$8 sps:$4 sm:$0xff]   ;;  %v435_v54 = vld [vmem:[%s2699_s10 + $0x80] sm:$0xff]  ;;  %v1902_v61 = vld [vmem:[%s2713_s30 + $0x80] ss:$8 sps:$4 sm:$0xff]   ;;  %2175 = vmac.bf16.f32.vacc0 %v426_v46, %v2774_v40  ;;  %p1655_p10 = scmp.ne.s32.totalorder %s3115_s18, 1 }
  0xf1   : > { %1262 = vmatprep.subr.bf16.mxu0 %v1843_v15  ;;  %v1555_v55 = vld [vmem:[%s2699_s10 + $0x94] sm:$0xff]  ;;  %v1558_v56 = vld [vmem:[%s2699_s10 + $0xa8] sm:$0xff]  ;;  %2176 = vmac.bf16.f32.vacc0 %v429_v49, %v2777_v41  ;;  %v2331_v14 = vmov 1935823168  }
  0xf2   : > { %1220 = vmatpush1.bf16.msra.mxu1 %v1878_v25  ;;  %v1877_v57 = vld [vmem:[%s2713_s30 + $0x1b0] ss:$8 sps:$4 sm:$0xff]   ;;  %v1564_v59 = vld [vmem:[%s2699_s10 + $0xd0] sm:$0xff]  ;;  %v1906_v63 = vld [vmem:[%s2713_s30 + $0x94] ss:$8 sps:$4 sm:$0xff]   ;;  %2195 = vmul.bf16.f32.vacc1 %v1555_v55, %v361_v35  ;;  %2177 = vmac.bf16.f32.vacc0 %v432_v52, %v2780_v42  ;;  %v2183_v15 = vunpack.c.l.s4 %v2331_v14 }
  0xf3   : > { %1221 = vmatprep.subr.bf16.mxu1 %v1881_v27  ;;  %v1879_v60 = vld [vmem:[%s2713_s30 + $0x1c4] ss:$8 sps:$4 sm:$0xff]   ;;  %v1567_v62 = vld [vmem:[%s2699_s10 + $0xe4] sm:$0xff]  ;;  %2196 = vmac.bf16.f32.vacc1 %v1558_v56, %v364_v36  ;;  %2178 = vmac.bf16.f32.vacc0 %v435_v54, %v2788_v48 }
  0xf4   : > { %1263 = vmatpush1.bf16.msra.mxu0 %v1845_v18  ;;  %v1570_v0 = vld [vmem:[%s2699_s10 + $0xf8] sm:$0xff]  ;;  %v1573_v3 = vld [vmem:[%s2699_s10 + $0x10c] sm:$0xff]  ;;  %2197 = vmac.bf16.f32.vacc1 %v1561_v58, %v367_v39  ;;  %v2184_v16 = vunpack.c.0.s8 %v2183_v15  ;;  %v2819_v18 = vshrl.u32 %v2185_v17, 7  ;;  %v416_v56 = vld [vmem:[%s2699_s10] sm:$0xff] }
  0xf5   : > { %1264 = vmatprep.subr.bf16.mxu0 %v1846_v20  ;;  %v1883_v1 = vld [vmem:[%s2713_s30 + $0x1c0] ss:$8 sps:$4 sm:$0xff]   ;;  %v1908_v2 = vld [vmem:[%s2713_s30 + $0x90] ss:$8 sps:$4 sm:$0xff]   ;;  %v1885_v4 = vld [vmem:[%s2713_s30 + $0x1d4] ss:$8 sps:$4 sm:$0xff]   ;;  %v2179_v10 = vmovacc.add.low.vacc0  ;;  %2198 = vmac.bf16.f32.vacc1 %v1564_v59, %v2774_v40 }
  0xf6   : > { %1222 = vmatpush1.bf16.msra.mxu1 %v1884_v30  ;;  %v1912_v5 = vld [vmem:[%s2713_s30 + $0xa4] ss:$8 sps:$4 sm:$0xff]   ;;  %v1889_v6 = vld [vmem:[%s2713_s30 + $0x1d0] ss:$8 sps:$4 sm:$0xff]   ;;  %v1914_v7 = vld [vmem:[%s2713_s30 + $0xa0] ss:$8 sps:$4 sm:$0xff]   ;;  %v2180_v11 = vmovacc.add.high.vacc0  ;;  %v2822_v19 = vsub.s32 %v2184_v16, %v2819_v18  ;;  %2199 = vmac.bf16.f32.vacc1 %v1567_v62, %v2777_v41 }
  0xf7   : > { %1223 = vmatprep.subr.bf16.mxu1 %v1887_v31  ;;  %v1918_v8 = vld [vmem:[%s2713_s30 + $0xb4] ss:$8 sps:$4 sm:$0xff]   ;;  %v1891_v9 = vld [vmem:[%s2713_s30 + $0x1e4] ss:$8 sps:$4 sm:$0xff]   ;;  %v1895_v22 = vld [vmem:[%s2713_s30 + $0x1e0] ss:$8 sps:$4 sm:$0xff]   ;;  %2200 = vmac.bf16.f32.vacc1 %v1570_v0, %v2780_v42 }
  0xf8   : > { %1265 = vmatpush1.bf16.msra.mxu0 %v1848_v21  ;;  %v2181_v12 = vcombine.low %v2179_v10, %v2180_v11  ;;  %v2182_v13 = vcombine.high %v2179_v10, %v2180_v11  ;;  %v1920_v23 = vld [vmem:[%s2713_s30 + $0xb0] ss:$8 sps:$4 sm:$0xff]   ;;  %v1924_v25 = vld [vmem:[%s2713_s30 + $0xc4] ss:$8 sps:$4 sm:$0xff]   ;;  %2201 = vmac.bf16.f32.vacc1 %v1573_v3, %v2788_v48  ;;  %v1938_v55 = vld [vmem:[%s2713_s30 + $0xe0] ss:$8 sps:$4 sm:$0xff]  }
  0xf9   : > { %1266 = vmatprep.subr.bf16.mxu0 %v1849_v24  ;;  %v2843_v39 = vld [vmem:[%s2706_s25 + $0x14] sm:$0xff]  ;;  %v2847_v41 = vld [vmem:[%s2706_s25 + $0x28] sm:$0xff]  ;;  %v2850_v44 = vld [vmem:[%s2706_s25 + $0x3c] sm:$0xff] }
  0xfa   : > { %1224 = vmatpush1.bf16.msra.mxu1 %v1890_v34  ;;  %v2188_v20 = vrot.slane %v2181_v12, %v2822_v19  ;;  %v2194_v21 = vrot.slane %v2182_v13, %v2822_v19  ;;  %v2202_v31 = vmovacc.add.low.vacc1  ;;  %v1905_v40 = vld [vmem:[%s2713_s30 + $0x204] ss:$8 sps:$4 sm:$0xff]   ;;  %v1932_v45 = vld [vmem:[%s2713_s30 + $0xd0] ss:$8 sps:$4 sm:$0xff]  }
  0xfb   : > { %1225 = vmatprep.subr.bf16.mxu1 %v1893_v38  ;;  %v2840_v38 = vld [vmem:[%s2706_s25] sm:$0xff]  ;;  %v2854_v46 = vld [vmem:[%s2706_s25 + $0x50] sm:$0xff]  ;;  %v2861_v52 = vld [vmem:[%s2706_s25 + $0x78] sm:$0xff] }
  0xfc   : > { %1267 = vmatpush1.bf16.msra.mxu0 %v1853_v26  ;;  %v549_v24 = vrot.slane %v2194_v21, 4  ;;  %v1897_v26 = vld [vmem:[%s2713_s30 + $0x1f4] ss:$8 sps:$4 sm:$0xff]   ;;  %v537_v49 = vrot.slane %v2188_v20, 4  ;;  %2218 = vmul.bf16.f32.vacc2 %v416_v56, %v2840_v38 }
  0xfd   : > { %1268 = vmatprep.subr.bf16.mxu0 %v1855_v28  ;;  %v1901_v28 = vld [vmem:[%s2713_s30 + $0x1f0] ss:$8 sps:$4 sm:$0xff]   ;;  %v1554_v13 = vld [vmem:[%s2699_s10 + $0x8c] sm:$0xff] }
  0xfe   : > { %1226 = vmatpush1.bf16.msra.mxu1 %v1896_v51  ;;  %v550_v27 = vadd.f32 %v2194_v21, %v549_v24  ;;  %v2858_v51 = vld [vmem:[%s2706_s25 + $0x64] sm:$0xff]  ;;  %v538_v54 = vadd.f32 %v2188_v20, %v537_v49  ;;  %v425_v0 = vld [vmem:[%s2699_s10 + $0x3c] sm:$0xff]  ;;  %2241 = vmul.bf16.f32.vacc3 %v1554_v13, %v2840_v38 }
  0xff   : > { %1227 = vmatprep.subr.bf16.mxu1 %v1899_v53  ;;  %v431_v3 = vld [vmem:[%s2699_s10 + $0x64] sm:$0xff]  ;;  %v1560_v20 = vld [vmem:[%s2699_s10 + $0xb4] sm:$0xff] }
 0x100   : > { %1269 = vmatpush1.bf16.msra.mxu0 %v1859_v29  ;;  %v1926_v29 = vld [vmem:[%s2713_s30 + $0xc0] ss:$8 sps:$4 sm:$0xff]   ;;  %v551_v30 = vrot.slane %v550_v27, 2  ;;  %v539_v62 = vrot.slane %v538_v54, 2  ;;  %v1557_v14 = vld [vmem:[%s2699_s10 + $0xa0] sm:$0xff] }
 0x101   : > { %1270 = vmatprep.subr.bf16.mxu0 %v1861_v32  ;;  %v2203_v32 = vmovacc.add.high.vacc1  ;;  %v1563_v21 = vld [vmem:[%s2699_s10 + $0xc8] sm:$0xff]  ;;  %v1569_v24 = vld [vmem:[%s2699_s10 + $0xf0] sm:$0xff]  ;;  %2242 = vmac.bf16.f32.vacc3 %v1557_v14, %v2843_v39 }
 0x102   : > { %1228 = vmatpush1.bf16.msra.mxu1 %v1902_v61  ;;  %v552_v42 = vadd.f32 %v551_v30, %v550_v27  ;;  %v1909_v30 = vld [vmem:[%s2713_s30 + $0x210] ss:$8 sps:$4 sm:$0xff]   ;;  %2243 = vmac.bf16.f32.vacc3 %v1560_v20, %v2847_v41 }
 0x103   : > { %1229 = vmatprep.subr.bf16.mxu1 %v1906_v63  ;;  %v2205_v34 = vcombine.high %v2202_v31, %v2203_v32  ;;  %v1942_v63 = vld [vmem:[%s2713_s30 + $0xf4] ss:$8 sps:$4 sm:$0xff]   ;;  %2244 = vmac.bf16.f32.vacc3 %v1563_v21, %v2850_v44 }
 0x104   : > { %1271 = vmatpush1.bf16.msra.mxu0 %v1865_v33  ;;  %v2204_v33 = vcombine.low %v2202_v31, %v2203_v32  ;;  %v1917_v31 = vld [vmem:[%s2713_s30 + $0x224] ss:$8 sps:$4 sm:$0xff]   ;;  %v2332_v32 = vmov 0  }
 0x105   : > { %1272 = vmatprep.subr.bf16.mxu0 %v1867_v37  ;;  %v2217_v36 = vrot.slane %v2205_v34, %v2822_v19  ;;  %v1930_v37 = vld [vmem:[%s2713_s30 + $0xd4] ss:$8 sps:$4 sm:$0xff]  }
 0x106   : > { %1230 = vmatpush1.bf16.msra.mxu1 %v1908_v2  ;;  %v2211_v35 = vrot.slane %v2204_v33, %v2822_v19  ;;  %v428_v2 = vld [vmem:[%s2699_s10 + $0x50] sm:$0xff]  ;;  %v424_v49 = vld [vmem:[%s2699_s10 + $0x38] ss:$20 sps:$4 sm:$0xff]   ;;  %v436_v14 = vld [vmem:[%s2699_s10 + $0x88] ss:$20 sps:$4 sm:$0xff]  }
 0x107   : > { %1231 = vmatprep.subr.bf16.mxu1 %v1912_v5  ;;  %v701_v43 = vrot.slane %v2217_v36, 4  ;;  %v540_v5 = vadd.f32 %v539_v62, %v538_v54  ;;  %v471_v21 = vunpack.c.l.bf16 %v436_v14 }
 0x108   : > { %1273 = vmatpush1.bf16.msra.mxu0 %v1871_v47  ;;  %v553_v47 = vrot.slane %v552_v42, 1  ;;  %v689_v59 = vrot.slane %v2211_v35, 4 }
 0x109   : > { %1274 = vmatprep.subr.bf16.mxu0 %v1873_v50  ;;  %v702_v48 = vadd.f32 %v2217_v36, %v701_v43  ;;  %v1936_v50 = vld [vmem:[%s2713_s30 + $0xe4] ss:$8 sps:$4 sm:$0xff]   ;;  %v541_v10 = vrot.slane %v540_v5, 1 }
 0x10a   : > { %1232 = vmatpush1.bf16.msra.mxu1 %v1914_v7  ;;  %v554_v58 = vadd.f32 %v553_v47, %v552_v42  ;;  %v2907_v43 = vld [vmem:[%s2706_s25 + $0x38] ss:$20 sps:$4 sm:$0xff]  }
 0x10b   : > { %1233 = vmatprep.subr.bf16.mxu1 %v1918_v8  ;;  %v703_v53 = vrot.slane %v702_v48, 2  ;;  %v1944_v8 = vld [vmem:[%s2713_s30 + $0xf0] ss:$8 sps:$4 sm:$0xff]   ;;  %v542_v16 = vadd.f32 %v541_v10, %v540_v5  ;;  %v395_v54 = vunpack.c.l.bf16 %v2907_v43  ;;  %v456_v5 = vunpack.c.h.bf16 %v424_v49 }
 0x10c   : > { %1275 = vmatpush1.bf16.msra.mxu0 %v1877_v57  ;;  %v419_v57 = vld [vmem:[%s2699_s10 + $0x14] sm:$0xff] }
 0x10d   : > { %1276 = vmatprep.subr.bf16.mxu0 %v1879_v60  ;;  %v422_v60 = vld [vmem:[%s2699_s10 + $0x28] sm:$0xff]  ;;  %v704_v61 = vadd.f32 %v703_v53, %v702_v48  ;;  %2219 = vmac.bf16.f32.vacc2 %v419_v57, %v2843_v39  ;;  %v400_v57 = vunpack.c.h.bf16 %v2907_v43 }
 0x10e   : > { %1234 = vmatpush1.bf16.msra.mxu1 %v1920_v23  ;;  %v1566_v23 = vld [vmem:[%s2699_s10 + $0xdc] sm:$0xff]  ;;  %2220 = vmac.bf16.f32.vacc2 %v422_v60, %v2847_v41  ;;  %v1915_v39 = vld [vmem:[%s2713_s30 + $0x220] ss:$8 sps:$4 sm:$0xff]  }
 0x10f   : > { %1235 = vmatprep.subr.bf16.mxu1 %v1924_v25  ;;  %v1572_v25 = vld [vmem:[%s2699_s10 + $0x104] sm:$0xff]  ;;  %2221 = vmac.bf16.f32.vacc2 %v425_v0, %v2850_v44  ;;  %2245 = vmac.bf16.f32.vacc3 %v1566_v23, %v2854_v46 }
 0x110   : > { %1277 = vmatpush1.bf16.msra.mxu0 %v1883_v1  ;;  %v690_v1 = vadd.f32 %v2211_v35, %v689_v59  ;;  %2222 = vmac.bf16.f32.vacc2 %v428_v2, %v2854_v46  ;;  %v1923_v41 = vld [vmem:[%s2713_s30 + $0x234] ss:$8 sps:$4 sm:$0xff]   ;;  %2246 = vmac.bf16.f32.vacc3 %v1569_v24, %v2858_v51  ;;  %v1933_v23 = vld [vmem:[%s2713_s30 + $0x250] ss:$8 sps:$4 sm:$0xff]  }
 0x111   : > { %1278 = vmatprep.subr.bf16.mxu0 %v1885_v4  ;;  %v705_v4 = vrot.slane %v704_v61, 1  ;;  %2223 = vmac.bf16.f32.vacc2 %v431_v3, %v2858_v51  ;;  %v2916_v44 = vld [vmem:[%s2706_s25 + $0x60] ss:$20 sps:$4 sm:$0xff]   ;;  %v2922_v46 = vld [vmem:[%s2706_s25 + $0x88] sm:$0xf]  ;;  %2247 = vmac.bf16.f32.vacc3 %v1572_v25, %v2861_v52 }
 0x112   : > { %1236 = vmatpush1.bf16.msra.mxu1 %v1926_v29  ;;  %v691_v7 = vrot.slane %v690_v1, 2  ;;  %v1911_v29 = vld [vmem:[%s2713_s30 + $0x214] ss:$8 sps:$4 sm:$0xff]   ;;  %v405_v3 = vunpack.c.l.bf16 %v2916_v44 }
 0x113   : > { %1237 = vmatprep.subr.bf16.mxu1 %v1930_v37  ;;  %v2248_v59 = vmovacc.add.low.vacc3 }
 0x114   : > { %1279 = vmatpush1.bf16.msra.mxu0 %v1889_v6  ;;  %v434_v6 = vld [vmem:[%s2699_s10 + $0x78] sm:$0xff]  ;;  %v692_v11 = vadd.f32 %v691_v7, %v690_v1  ;;  %v2249_v51 = vmovacc.add.high.vacc3  ;;  %v451_v1 = vunpack.c.l.bf16 %v424_v49  ;;  %v410_v7 = vunpack.c.h.bf16 %v2916_v44 }
 0x115   : > { %1280 = vmatprep.subr.bf16.mxu0 %v1891_v9  ;;  %v706_v9 = vadd.f32 %v705_v4, %v704_v61  ;;  %2224 = vmac.bf16.f32.vacc2 %v434_v6, %v2861_v52  ;;  %v430_v4 = vld [vmem:[%s2699_s10 + $0x60] ss:$20 sps:$4 sm:$0xff]   ;;  %v1927_v52 = vld [vmem:[%s2713_s30 + $0x240] ss:$8 sps:$4 sm:$0xff]  }
 0x116   : > { %1238 = vmatpush1.bf16.msra.mxu1 %v1932_v45  ;;  %v693_v17 = vrot.slane %v692_v11, 1  ;;  %v418_v45 = vld [vmem:[%s2699_s10 + $0x10] ss:$20 sps:$4 sm:$0xff]   ;;  %v2250_v60 = vcombine.low %v2248_v59, %v2249_v51  ;;  %v2251_v61 = vcombine.high %v2248_v59, %v2249_v51  ;;  %v466_v20 = vunpack.c.h.bf16 %v430_v4 }
 0x117   : > { %1239 = vmatprep.subr.bf16.mxu1 %v1936_v50  ;;  %v723_v12 = vsel %vm719_vm0, %v554_v58, %v706_v9  ;;  %v2225_v33 = vmovacc.add.low.vacc2  ;;  %v1921_v50 = vld [vmem:[%s2713_s30 + $0x230] ss:$8 sps:$4 sm:$0xff]   ;;  %v441_v58 = vunpack.c.l.bf16 %v418_v45  ;;  %v446_v0 = vunpack.c.h.bf16 %v418_v45  ;;  %v1935_v9 = vld [vmem:[%s2713_s30 + $0x254] ss:$8 sps:$4 sm:$0xff]   ;;  %v1939_v45 = vld [vmem:[%s2713_s30 + $0x260] ss:$8 sps:$4 sm:$0xff]  }
 0x118   : > { %1281 = vmatpush1.bf16.msra.mxu0 %v1895_v22  ;;  %v729_v15 = vpack.c.bf16 %v723_v12, %v723_v12  ;;  %v694_v22 = vadd.f32 %v693_v17, %v692_v11  ;;  %v2226_v34 = vmovacc.add.high.vacc2  ;;  %v2257_v62 = vrot.slane %v2250_v60, %v2822_v19  ;;  %v1559_v17 = vld [vmem:[%s2699_s10 + $0xb0] ss:$20 sps:$4 sm:$0xff]  }
 0x119   : > { %1282 = vmatprep.subr.bf16.mxu0 %v1897_v26  ;;  %v1903_v26 = vld [vmem:[%s2713_s30 + $0x200] ss:$8 sps:$4 sm:$0xff]  }
 0x11a   : > { %1240 = vmatpush1.bf16.msra.mxu1 %v1938_v55  ;;  %1284 = vmatprep.mubr.bf16.mxu0 %v729_v15  ;;  %v722_v27 = vsel %vm719_vm0, %v542_v16, %v694_v22  ;;  %v2227_v35 = vcombine.low %v2225_v33, %v2226_v34  ;;  %v2228_v36 = vcombine.high %v2225_v33, %v2226_v34  ;;  %v1929_v55 = vld [vmem:[%s2713_s30 + $0x244] ss:$8 sps:$4 sm:$0xff]   ;;  %v461_v15 = vunpack.c.l.bf16 %v430_v4 }
 0x11b   : > { %1241 = vmatprep.subr.bf16.mxu1 %v1942_v63  ;;  %v2263_v63 = vrot.slane %v2251_v61, %v2822_v19  ;;  %v486_v16 = vmul.f32 %v451_v1, %v395_v54  ;;  %v491_v22 = vmul.f32 %v456_v5, %v400_v57  ;;  %v603_v33 = vunpack.c.h.bf16 %v1559_v17 }
 0x11c   : > { %1283 = vmatpush1.bf16.msra.mxu0 %v1901_v28  ;;  %v728_v28 = vpack.c.bf16 %v722_v27, %v722_v27  ;;  %v2897_v37 = vrot.slane %v2227_v35, %v2822_v19  ;;  %v2240_v38 = vrot.slane %v2228_v36, %v2822_v19  ;;  %v496_v36 = vmul.f32 %v461_v15, %v405_v3 }
 0x11d   : > { %1293 = vmatprep.subr.bf16.mxu0 %v1905_v40  ;;  %v2903_v40 = vld [vmem:[%s2706_s25 + $0x10] ss:$20 sps:$4 sm:$0xff]   ;;  %v677_v6 = vrot.slane %v2263_v63, 4  ;;  %v638_v60 = vmul.f32 %v603_v33, %v395_v54 }
 0x11e   : > { %1242 = vmatpush1.bf16.msra.mxu1 %v1944_v8  ;;  %v525_v42 = vrot.slane %v2240_v38, 4  ;;  %v385_v48 = vunpack.c.l.bf16 %v2903_v40  ;;  %v390_v53 = vunpack.c.h.bf16 %v2903_v40  ;;  %v415_v8 = vunpack.c.l.bf16 %v2922_v46  ;;  %v1945_v40 = vld [vmem:[%s2713_s30 + $0x270] ss:$8 sps:$4 sm:$0xff]  }
 0x11f   : > { %1285 = vmatmul.mubr.bf16.vlgmr.msra.gmra.mrb[0].mxu0 %v728_v28  ;;  %v678_v12 = vadd.f32 %v2263_v63, %v677_v6  ;;  %v513_v13 = vrot.slane %v2897_v37, 4  ;;  %v1565_v28 = vld [vmem:[%s2699_s10 + $0xd8] ss:$20 sps:$4 sm:$0xff]  }
 0x120   : > { %1294 = vmatpush1.bf16.msra.mxu0 %v1903_v26  ;;  %1325 = vmatprep.mubr.bf16.mxu0 %v2332_v32  ;;  %v526_v47 = vadd.f32 %v2240_v38, %v525_v42  ;;  %v476_v10 = vmul.f32 %v441_v58, %v385_v48  ;;  %v481_v11 = vmul.f32 %v446_v0, %v390_v53  ;;  %v598_v32 = vunpack.c.l.bf16 %v1559_v17  ;;  %v1947_v58 = vld [vmem:[%s2713_s30 + $0x274] ss:$8 sps:$4 sm:$0xff]  }
 0x121   : > { %1295 = vmatprep.subr.bf16.mxu0 %v1911_v29  ;;  %v679_v25 = vrot.slane %v678_v12, 2  ;;  %v514_v26 = vadd.f32 %v2897_v37, %v513_v13  ;;  %v1941_v29 = vld [vmem:[%s2713_s30 + $0x264] ss:$8 sps:$4 sm:$0xff]   ;;  %v501_v37 = vmul.f32 %v466_v20, %v410_v7  ;;  %v613_v42 = vunpack.c.h.bf16 %v1565_v28 }
 0x122   : > { %v527_v56 = vrot.slane %v526_v47, 2  ;;  %v555_v27 = vadd.f32 %v481_v11, %v476_v10  ;;  %v633_v51 = vmul.f32 %v598_v32, %v390_v53  ;;  %v506_v63 = vmul.f32 %v471_v21, %v415_v8 }
 0x123   : > { %v680_v34 = vadd.f32 %v679_v25, %v678_v12  ;;  %v515_v35 = vrot.slane %v514_v26, 2  ;;  %v648_v54 = vmul.f32 %v613_v42, %v405_v3 }
 0x124   : > { %1296 = vmatpush1.bf16.msra.mxu0 %v1909_v30  ;;  %v528_v2 = vadd.f32 %v527_v56, %v526_v47  ;;  %v665_v30 = vrot.slane %v2257_v62, 4  ;;  %v556_v38 = vadd.f32 %v555_v27, %v486_v16 }
 0x125   : > { %1297 = vmatprep.subr.bf16.mxu0 %v1917_v31  ;;  %v593_v31 = vunpack.c.h.bf16 %v436_v14  ;;  %v681_v47 = vrot.slane %v680_v34, 1  ;;  %v516_v49 = vadd.f32 %v515_v35, %v514_v26 }
 0x126   : > { %v529_v19 = vrot.slane %v528_v2, 1 }
 0x127   : > { %v628_v56 = vmul.f32 %v593_v31, %v385_v48  ;;  %v682_v61 = vadd.f32 %v681_v47, %v680_v34  ;;  %v2333_v34 = vmov 1983009808  }
 0x128   : > { %1298 = vmatpush1.bf16.msra.mxu0 %v1915_v39  ;;  %v530_v24 = vadd.f32 %v529_v19, %v528_v2  ;;  %v666_v39 = vadd.f32 %v2257_v62, %v665_v30  ;;  %v517_v62 = vrot.slane %v516_v49, 1  ;;  %v1338_v35 = vunpack.c.l.s4 %v2333_v34 }
 0x129   : > { %1299 = vmatprep.subr.bf16.mxu0 %v1923_v41  ;;  %v608_v41 = vunpack.c.l.bf16 %v1565_v28  ;;  %v707_v4 = vadd.f32 %v633_v51, %v628_v56  ;;  %v1360_v51 = vsub.s32 (!%p1655_p10), 1, %v2819_v18 }
 0x12a   : > { %v667_v59 = vrot.slane %v666_v39, 2  ;;  %v721_v5 = vsel %vm719_vm0, %v530_v24, %v682_v61 }
 0x12b   : > { %v643_v48 = vmul.f32 %v608_v41, %v400_v57  ;;  %v727_v6 = vpack.c.bf16 %v721_v5, %v721_v5  ;;  %v708_v10 = vadd.f32 %v707_v4, %v638_v60 }
 0x12c   : > { %1300 = vmatpush1.bf16.msra.mxu0 %v1921_v50  ;;  %v557_v50 = vadd.f32 %v556_v38, %v491_v22  ;;  %v668_v1 = vadd.f32 %v667_v59, %v666_v39  ;;  %v1356_v59 = vsub.s32 (!%p1655_p10), 0, %v2819_v18 }
 0x12d   : > { %1301 = vmatprep.subr.bf16.mxu0 %v1929_v55  ;;  %v1571_v55 = vld [vmem:[%s2699_s10 + $0x100] ss:$20 sps:$4 sm:$0xff]   ;;  %1243 = vmatprep.mubr.bf16.mxu1 %v727_v6  ;;  %v709_v57 = vadd.f32 %v708_v10, %v643_v48 }
 0x12e   : > { %v558_v0 = vadd.f32 %v557_v50, %v496_v36  ;;  %v618_v2 = vunpack.c.l.bf16 %v1571_v55  ;;  %v669_v19 = vrot.slane %v668_v1, 1  ;;  %v1339_v36 = vunpack.c.0.s8 %v1338_v35  ;;  %v725_v50 = vld [vmem:[#allocation2] sm:$0xf] }
 0x12f   : > { %v710_v3 = vadd.f32 %v709_v57, %v648_v54 }
 0x130   : > { %1302 = vmatpush1.bf16.msra.mxu0 %v1927_v52  ;;  %v559_v53 = vadd.f32 %v558_v0, %v501_v37  ;;  %v623_v52 = vunpack.c.h.bf16 %v1571_v55  ;;  %v670_v12 = vadd.f32 %v669_v19, %v668_v1  ;;  %v653_v43 = vmul.f32 %v618_v2, %v410_v7 }
 0x131   : > { %1303 = vmatprep.subr.bf16.mxu0 %v1935_v9  ;;  %v518_v9 = vadd.f32 %v517_v62, %v516_v49  ;;  %v1342_v42 = vsub.s32 %v1339_v36, %v2819_v18 }
 0x132   : > { %v560_v11 = vadd.f32 %v559_v53, %v506_v63  ;;  %v658_v15 = vmul.f32 %v623_v52, %v415_v8  ;;  %v711_v20 = vadd.f32 %v710_v3, %v653_v43 }
 0x133   : > { %v720_v14 = vsel %vm719_vm0, %v518_v9, %v670_v12 }
 0x134   : > { %1304 = vmatpush1.bf16.msra.mxu0 %v1933_v23  ;;  %v561_v13 = vrot.slane %v560_v11, 4  ;;  %v726_v16 = vpack.c.bf16 %v720_v14, %v720_v14  ;;  %v712_v22 = vadd.f32 %v711_v20, %v658_v15 }
 0x135   : > { %1305 = vmatprep.subr.bf16.mxu0 %v1941_v29 }
 0x136   : > { %v562_v17 = vadd.f32 %v561_v13, %v560_v11  ;;  %1244 = vmatmul.mubr.bf16.vlgmr.msra.gmra.mrb[0].mxu1 %v726_v16  ;;  %v713_v24 = vrot.slane %v712_v22, 4 }
 0x138   : > { %1306 = vmatpush1.bf16.msra.mxu0 %v1939_v45  ;;  %v563_v21 = vrot.slane %v562_v17, 2  ;;  %v714_v25 = vadd.f32 %v713_v24, %v712_v22 }
 0x139   : > { %1307 = vmatprep.subr.bf16.mxu0 %v1947_v58  ;;  %v1352_v58 = vld [vmem:[%s2724_s3] sm:$0x3] (!%p1655_p10) }
 0x13a   : > { %v564_v23 = vadd.f32 %v563_v21, %v562_v17  ;;  %v715_v7 = vrot.slane %v714_v25, 2  ;;  %v1357_v60 = vrot.slane (!%p1655_p10), %v1352_v58, %v1356_v59  ;;  %v1361_v61 = vrot.slane (!%p1655_p10), %v1352_v58, %v1360_v51 }
 0x13c   : > { %1308 = vmatpush1.bf16.msra.mxu0 %v1945_v40  ;;  %v565_v44 = vrot.slane %v564_v23, 1  ;;  %v716_v26 = vadd.f32 %v715_v7, %v714_v25  ;;  %v1362_v62 = vcombine.low (!%p1655_p10), %v1357_v60, %v1361_v61 }
 0x13e   : > { %v566_v27 = vadd.f32 %v565_v44, %v564_v23  ;;  %v717_v28 = vrot.slane %v716_v26, 1  ;;  %v1369_v0 = vrot.slane (!%p1655_p10), %v1362_v62, %v1342_v42 }
 0x140   : > { %v718_v29 = vadd.f32 %v717_v28, %v716_v26 }
 0x142   : > { %v724_v30 = vsel %vm719_vm0, %v566_v27, %v718_v29 }
 0x143   : > { %v730_v46 = vpack.c.bf16 %v724_v30, %v724_v30 }
 0x145   : > { %1326 = vmatmul.mubr.bf16.vlgmr.msra.gmra.mrb[0].mxu0 %v730_v46 }
 0x209   : > { %v1245_v8 = vpop.f32.mrb[0].mxu1 }
 0x20a   : > { %v1247_v31 = vpop.f32.mrb[1].mxu1 }
 0x20b   : > { %v1249_v32 = vpop.f32.mrb[2].mxu1 }
 0x20c   : > { %v1250_v33 = vpop.f32.mrb[3].mxu1 }
 0x218   : > { %v1327_v38 = vpop.f32.mrb[0].mxu0 }
 0x219   : > { %v1666_v39 = vadd.f32 %v1327_v38, %v1245_v8  ;;  %v1329_v37 = vpop.f32.mrb[1].mxu0 }
 0x21a   : > { %v1667_v41 = vadd.f32 %v1329_v37, %v1247_v31  ;;  %v1331_v45 = vpop.f32.mrb[2].mxu0 }
 0x21b   : > { %v1332_v47 = vpop.f32.mrb[3].mxu0 }
 0x21c   : > { %v1336_v49 = vcombine.low %v1666_v39, %v1667_v41  ;;  %1350 = sbr.rel (%p1655_p10) target bundleno = 557 (0x22d), region = 60 }
 0x21e   : > { %v1343_v55 = vrot.slane %v1336_v49, %v1342_v42 }
 0x220   : > { %v1345_v56 = vadd.f32 %v1343_v55, %v725_v50 }
 0x222   : > { %1346 = vst [vmem:[#allocation2] sm:$0xf] %v1345_v56 }
 0x229   : > { %v1351_v63 = vld [vmem:[#allocation2] sm:$0xf] }
 0x22a   : > { %v1371_v1 = vadd.f32 %v1369_v0, %v1351_v63 }
 0x22c   : > { %1372 = vst [vmem:[%s2731_s15] sm:$0xf] %v1371_v1 }
 0x22d PF: > { %s3116_s10 = sld [smem:[#allocation20_spill]]  ;;  %s3117_s21 = sld [smem:[#allocation27_spill]] }
 0x22e   : > { %s1388_s7 = sshll.u32 %s2731_s15, 4  ;;  %s1374_s0 = scalar_lea.sflag [#allocation5], %s2720_s14  ;;  %s1389_s7 = int_to_ptr.vmem [resolvable:$true] %s1388_s7 }
 0x22f   : > { %s2068_s5 = scalar_lea.vmem %s1389_s7, 64  ;;  %p3119_p13 = scmp.ne.s32.totalorder %s3103_s9, 0 }
 0x230   : > { %p2069_p9 = scmp.ne.s32.totalorder %s1389_s7, %s2068_s5  ;;  %s2334_s3 = smov [#allocation11]  }
 0x231   : > { %s2072_s16 = sshll.u32 %s2334_s3, 4  ;;  %s2073_s16 = int_to_ptr.vmem [resolvable:$false] %s2072_s16 }
 0x232   : > { %p2070_p4 = pnand %p2069_p9, %p3119_p13  ;;  %s2074_s11 = scalar_lea.vmem %s2073_s16, 128 }
 0x233   : > { %s1665_s1 = sshll.u32 %s3116_s10, 6  ;;  %s3118_s6 = smov %s3117_s21 }
 0x234   : > { %s2986_s30 = scalar_lea.hbm %s3117_s21, %s1665_s1  ;;  %p2071_p7 = pneg %p2070_p4 }
 0x235   : > { %p2075_p5 = scmp.lt.s32.totalorder %s1389_s7, %s2073_s16  ;;  %p2076_p3 = scmp.lt.s32.totalorder %s2074_s11, %s2068_s5 }
 0x237   : > { %p2077_p12 = por %p2076_p3, %p2075_p5 }
 0x239   : > { %p2078_p1 = pnand %p2077_p12, %p2071_p7 }
 0x23b   : > { %2081 = shalt.err (!%p2078_p1)
}
 0x23c   : > { %s2082_s14 = scalar_lea.hbm %s2986_s30, 64  ;;  %s2086_s10 = scalar_lea.hbm %s3118_s6, 128 }
 0x23d   : > { %p2083_p2 = scmp.ne.s32.totalorder %s2986_s30, %s2082_s14  ;;  %p2087_p0 = scmp.lt.u32.totalorder %s2986_s30, %s3118_s6 }
 0x23e   : > { %p2088_p6 = scmp.lt.u32.totalorder %s2086_s10, %s2082_s14  ;;  %p2090_p9 = scmp.lt.u32.totalorder %s2082_s14, %s2986_s30 }
 0x23f   : > { %p2084_p11 = pnand %p2083_p2, %p3119_p13 }
 0x240   : > { %p2089_p10 = por %p2088_p6, %p2087_p0 }
 0x241   : > { %p2085_p8 = pneg %p2084_p11 }
 0x242   : > { %p2091_p4 = por %p2090_p9, %p2089_p10 }
 0x244   : > { %p2092_p7 = pnand %p2091_p4, %p2085_p8 }
 0x246   : > { %2095 = shalt.err (!%p2092_p7)
}
 0x247   : > { %1686 = dma.vmem_to_hbm [thread:$0]  (%p3119_p13), %s1389_s7, 64, %s2986_s30, %s1374_s0  }
 0x248 PF: > { %s3120_s25 = sld [smem:[#allocation17_spill]]  ;;  %p1706_p5 = scmp.ge.s32.totalorder %s2318_s28, 2 }
 0x249   : > { %p3121_p3 = scmp.ne.s32.totalorder %s3104_s13, 0 }
 0x24b   : > { %p1702_p12 = pnand %p1706_p5, %p3121_p3 }
 0x24e   : > { %s1400_s21 = sand.u32 1, %s3120_s25  }
 0x24f   : > { %s1401_s5 = scalar_lea.sflag [#allocation5], %s1400_s21 }
 0x250   : > { %2169 = dma.done.wait (!%p1702_p12), %s1401_s5, 64  }
 0x251   : > { %2171 = vsyncadd (!%p1702_p12), %s1401_s5, 4294967232  ;;  %s26_s28 = sadd.s32 1, %s2318_s28   ;;  %s3123_s15 = sld [smem:[#allocation18_spill]] }
 0x252   : > { %p3012_p1 = scmp.ge.s32.totalorder %s26_s28, 6   ;;  %s3124_s9 = sld [smem:[#allocation22_spill]] }
 0x253   : > { %s3125_s16 = smov %s2274_s17  ;;  %s3126_s17 = smov %s2637_s12 }
 0x254   : > { %s3127_s18 = smov %s2282_s19  ;;  %s3128_s19 = smov %s2286_s20 }
 0x255   : > { %s3129_s20 = smov %s2634_s8  ;;  %s3130_s21 = smov %s2294_s22 }
 0x256   : > { %s3131_s22 = smov %s2298_s23  ;;  %s3132_s23 = smov %s2606_s24 }
 0x257   : > { %s3133_s24 = smov %s2310_s26  ;;  %s3134_s25 = smov %s2314_s27 }
 0x258   : > { %s3135_s26 = smov %s3138_s29  ;;  %s3136_s27 = smov %s3124_s9 }
 0x259   :  { %25 = sbr.rel (!%p3012_p1) target bundleno = 20 (0x14), region = 127 }
 0x260   :  { %1406 = vsyncpa [#allocation4], 1 }
 0x261   :  { %1408 = vsyncpa [#allocation4 + $0x1], 1 }
 0x262   :  { %1409 = vsyncpa [#allocation7], 1 }
 0x263   :  { %1411 = vsyncpa [#allocation7 + $0x1], 1 }
 0x264   :  { %1412 = vsyncpa [#allocation10], 1 }
 0x265   :  { %1414 = vsyncpa [#allocation10 + $0x1], 1 }
 0x266   :  { %1415 = vsyncpa [#allocation5], 1 }
 0x267   :  { %1417 = vsyncpa [#allocation5 + $0x1], 1 }

</bundles_post_ra>
